<compile_context>
chip_gen: v7x
topology: tpu7x:2x2x1
jax: 0.10.0
libtpu: 0.0.40
codegen_flags: <defaults>
</compile_context>

<pallas_src>
import functools

import jax
import jax.numpy as jnp
from jax.experimental import pallas as pl
from jax.experimental.pallas import tpu as pltpu

_LANES = 128
_BLOCK_BYTES = 2 << 20        # 2 MiB per-buffer block cap (keep — see header)
_MIN_BLOCK_BYTES = 256 << 10  # never shrink blocks below this (step overhead)
_TARGET_BLOCKS = 8            # >= 4 blocks per TensorCore on v7x megacore
_BYPASS_BYTES = 256 << 10     # below this, plain XLA sigmoid is strictly cheaper


def _sigmoid_kernel(x_ref, o_ref, *, compute_dtype):
    # Load in native dtype, compute in `compute_dtype`, store in native dtype.
    # jax.nn.sigmoid keeps the transcendental on the EUP slot, so compute never
    # binds this mem-bound op.
    x = x_ref[...].astype(compute_dtype)
    o_ref[...] = jax.nn.sigmoid(x).astype(o_ref.dtype)


def _sublane_align(dtype):
    """Minimum sublane multiple for (8,128)-tiled layouts of this dtype."""
    itemsize = jnp.dtype(dtype).itemsize
    return {4: 8, 2: 16, 1: 32}.get(itemsize, 8)


def _compute_dtype(dtype):
    """f32 math for f32 inputs / old chips; native bf16 math on v6e/v7x."""
    dtype = jnp.dtype(dtype)
    if dtype == jnp.dtype(jnp.bfloat16):
        kind = ""
        try:
            kind = jax.devices()[0].device_kind.lower()
        except Exception:
            pass
        # v5e and earlier have no bf16 VPU/EUP; v6e/v7x do.
        if any(tag in kind for tag in ("v2", "v3", "v4", "v5")):
            return jnp.float32
        return jnp.bfloat16
    return jnp.float32


def _choose_block_rows(rows, dtype):
    """Block rows: <= 2 MiB, >= 256 KiB, aiming for ~_TARGET_BLOCKS blocks."""
    itemsize = jnp.dtype(dtype).itemsize
    sub = _sublane_align(dtype)
    cap = max(sub, (_BLOCK_BYTES // (_LANES * itemsize)) // sub * sub)
    floor = max(sub, (_MIN_BLOCK_BYTES // (_LANES * itemsize)) // sub * sub)
    target = -(-rows // _TARGET_BLOCKS)          # cdiv: ~8 blocks total
    target = -(-target // sub) * sub             # round up to sublane multiple
    return min(cap, max(floor, target))


def _pallas_sigmoid_2d(x2d, block_rows, compute_dtype):
    rows, lanes = x2d.shape
    assert lanes == _LANES
    kernel = functools.partial(_sigmoid_kernel, compute_dtype=compute_dtype)
    return pl.pallas_call(
        kernel,
        out_shape=jax.ShapeDtypeStruct((rows, lanes), x2d.dtype),
        grid_spec=pltpu.PrefetchScalarGridSpec(
            num_scalar_prefetch=0,
            # cdiv grid: last block may be partial; Pallas masks the tail
            # writes, so block_rows never has to divide rows.
            grid=(pl.cdiv(rows, block_rows),),
            in_specs=[pl.BlockSpec((block_rows, lanes), lambda i: (i, 0))],
            out_specs=pl.BlockSpec((block_rows, lanes), lambda i: (i, 0)),
        ),
        compiler_params=pltpu.CompilerParams(
            dimension_semantics=("parallel",),
        ),
    )(x2d)


def autoencoder_forward(x, l1_mode=False):
    """Pallas equivalent of AutoEncoder.forward.

    encoder/decoder are empty, so forward == (sigmoid(x), 0.0) in both modes.
    """
    # Match torch.sigmoid's promotion of non-float inputs.
    if not jnp.issubdtype(x.dtype, jnp.floating):
        x = x.astype(jnp.float32)

    orig_shape = x.shape
    dtype = x.dtype
    n = x.size
    nbytes = n * jnp.dtype(dtype).itemsize
    # No encoder/decoder children -> l1 loss is exactly 0.0 in both modes.
    l1_loss = jnp.float32(0.0)

    # Small-input bypass + lane-ragged fallback: XLA's fused elementwise
    # sigmoid is already a single HBM pass; for tiny tensors the pallas_call
    # launch dominates, and for n % 128 != 0 it avoids the old pad + slice
    # round trips (two extra full-tensor HBM passes).
    if nbytes < _BYPASS_BYTES or n % _LANES != 0:
        return jax.nn.sigmoid(x), l1_loss

    rows = n // _LANES
    x2d = jnp.ravel(x).reshape(rows, _LANES)  # lane-dense view, no padding
    block_rows = _choose_block_rows(rows, dtype)
    y2d = _pallas_sigmoid_2d(x2d, block_rows, _compute_dtype(dtype))
    return y2d.reshape(orig_shape), l1_loss


if __name__ == "__main__":
    key = jax.random.PRNGKey(0)
    k1, k2 = jax.random.split(key)

    # Module-consistent small NCHW input (2 KiB-class: takes the bypass path).
    x_small = jax.random.normal(k1, (2, 4, 16, 16), dtype=jnp.float32)
    y_small, l1_small = autoencoder_forward(x_small, l1_mode=False)

    # Larger input (512 KiB) that exercises the Pallas streaming kernel.
    x_big = jax.random.normal(k2, (8, 4, 64, 64), dtype=jnp.float32)
    y_big, l1_big = autoencoder_forward(x_big, l1_mode=False)

    jax.block_until_ready((y_small, y_big, l1_small, l1_big))

    for xin, yout in ((x_small, y_small), (x_big, y_big)):
        ref = jax.nn.sigmoid(xin)
        assert yout.shape == xin.shape and yout.dtype == xin.dtype
        assert float(jnp.max(jnp.abs(yout - ref))) < 1e-5
    assert float(l1_small) == 0.0 and float(l1_big) == 0.0

    print("KERNEL_OK")
</pallas_src>

<mosaic_0001>
module attributes {stable_mosaic.version = 11 : i64} {
  func.func @_sigmoid_kernel(%arg0: i32, %arg1: memref<512x128xf32, #tpu.memory_space<vmem>>, %arg2: memref<512x128xf32, #tpu.memory_space<vmem>>) attributes {dimension_semantics = [#tpu.dimension_semantics<parallel>], iteration_bounds = array<i64: 2>, scalar_prefetch = 0 : i64, scratch_operands = 0 : i64, tpu.core_type = #tpu.core_type<tc>, window_params = [{transform_indices = @transform_0, window_bounds = array<i64: 512, 128>}, {transform_indices = @transform_1, window_bounds = array<i64: 512, 128>}]} {
    %c0 = arith.constant 0 : index
    %c0_0 = arith.constant 0 : index
    %0 = vector.load %arg1[%c0, %c0_0] : memref<512x128xf32, #tpu.memory_space<vmem>>, vector<512x128xf32>
    %1 = arith.negf %0 : vector<512x128xf32>
    %2 = math.exp %1 : vector<512x128xf32>
    %cst = arith.constant 1.000000e+00 : f32
    %3 = vector.broadcast %cst : f32 to vector<512x128xf32>
    %4 = arith.addf %3, %2 : vector<512x128xf32>
    %5 = arith.divf %3, %4 : vector<512x128xf32>
    %c0_1 = arith.constant 0 : index
    %c0_2 = arith.constant 0 : index
    %6 = vector.load %arg2[%c0_1, %c0_2] : memref<512x128xf32, #tpu.memory_space<vmem>>, vector<512x128xf32>
    tpu.vector_store %arg2[%c0_1, %c0_2], %5 {strides = array<i32>} : memref<512x128xf32, #tpu.memory_space<vmem>>, vector<512x128xf32>,
    return
  }
  func.func @transform_0(%arg0: i32) -> (i32, i32) {
    %c0_i32 = arith.constant 0 : i32
    %c0_i32_0 = arith.constant 0 : i32
    return %arg0, %c0_i32 : i32, i32
  }
  func.func @transform_1(%arg0: i32) -> (i32, i32) {
    %c0_i32 = arith.constant 0 : i32
    %c0_i32_0 = arith.constant 0 : i32
    return %arg0, %c0_i32 : i32, i32
  }
}

</mosaic_0001>

<bundles_post_ra>
// kernel: tpu_custom_call.1
= control target key start
LH: loop header
LB: loop body
LE: loop exit
PB: predicated region body
PF: predicated region fallthrough
CT: control target
= control target key end

     0   :  { %6 = vsyncpa [#allocation3], 0  ;;  %s1535_s0 = inlined_call_operand.hbm [shape: f32[1024,128], index: 0, kind: input, shape index: {}]   ;;  %s1536_s1 = inlined_call_operand.hbm [shape: f32[1024,128], index: 1, kind: output, shape index: {}]  }
   0x1   :  { %8 = vsyncpa [#allocation3 + $0x1], 0 }
   0x2   :  { %9 = vsyncpa [#allocation4], 0 }
   0x3   :  { %11 = vsyncpa [#allocation4 + $0x1], 0  ;;  %s1236_s6 = smov 0   ;;  %s1238_s7 = smov 0  }
   0x4   :  { %s1240_s8 = smov 0   ;;  %s1242_s9 = smov 0  }
   0x5 LB: > { %s1257_s10 = sadd.s32 4294967295, %s1218_s9   ;;  %s736_s11 = sadd.s32 4294967294, %s1218_s9   ;;  %s1218_s9 = sphi %s1242_s9, %s1549_s9   ;;  %s1214_s8 = sphi %s1240_s8, %s1548_s8   ;;  %s1210_s7 = sphi %s1238_s7, %s1547_s7   ;;  %s1206_s6 = sphi %s1236_s6, %s1546_s6  }
   0x6   : > { %s1261_s12 = sadd.s32 1, %s1218_s9   ;;  %s24_s13 = sadd.s32 1, %s1214_s8 }
   0x7   : > { %s21_s14 = ssub.s32 %s1218_s9, %s1261_s12  ;;  %p31_p0 = scmp.ne.s32.totalorder %s1214_s8, %s1210_s7 }
   0x8   : > { %p22_p1 = scmp.eq.s32.totalorder %s21_s14, 0  ;;  %p32_p2 = scmp.eq.s32.totalorder %s1218_s9, 0 }
   0x9   : > { %p37_p3 = scmp.ne.s32.totalorder %s1210_s7, %s1206_s6  ;;  %p38_p4 = scmp.eq.s32.totalorder %s1257_s10, 0 }
   0xa   : > { %s1273_s15 = scalar_select %p22_p1, %s1214_s8, %s24_s13  }
   0xb   : > { %p1275_p5 = por %p32_p2, %p31_p0  ;;  %p1279_p6 = por %p38_p4, %p37_p3 }
   0xc   : > { %p61_p7 = scmp.eq.s32.totalorder %s1257_s10, 1  ;;  %p67_p8 = scmp.eq.s32.totalorder %s736_s11, 1 }
   0xd   : > { %p828_p10 = scmp.lt.s32.totalorder %s1218_s9, 2  ;;  %s87_s20 = sand.u32 1, %s1214_s8  }
   0xe   : > { %p1286_p11 = por %p61_p7, %p31_p0  ;;  %p1290_p12 = por %p67_p8, %p37_p3 }
   0xf   : > { %s814_s21 = sshll.u32 %s1218_s9, 13  ;;  %s739_s22 = sshll.u32 %s87_s20, 9 }
  0x10   : > { %s1540_s18 = scalar_select %p1286_p11, 1, 0 }
  0x11   : > { %s1541_s19 = scalar_select %p1290_p12, 1, 0 }
  0x12   : > { %s1299_s25 = scalar_lea.hbm %s1535_s0, %s814_s21  ;;  %s91_s26 = scalar_lea.vmem [#allocation2], %s739_s22 }
  0x13   : > { %s98_s27 = sshll.u32 %s91_s26, 4  ;;  %p1303_p13 = pnand %p828_p10, %p1275_p5  ;;  %s1307_s27 = int_to_ptr.vmem [resolvable:$true] %s98_s27 }
  0x14   : > { %s1309_s29 = scalar_lea.sflag [#allocation3], %s87_s20  ;;  %s1122_s30 = scalar_lea.hbm %s1299_s25, 8192 }
  0x15   : > { %p1123_p0 = scmp.ne.s32.totalorder %s1299_s25, %s1122_s30  ;;  %p1124_p1 = pneg %p1303_p13 }
  0x16   : > { %s1127_s4 = scalar_lea.hbm %s1535_s0, 16384  ;;  %p1128_p4 = scmp.lt.u32.totalorder %s1299_s25, %s1535_s0 }
  0x17   : > { %p1125_p2 = pnand %p1124_p1, %p1123_p0  ;;  %p1129_p5 = scmp.lt.u32.totalorder %s1127_s4, %s1122_s30 }
  0x18   : > { %p1131_p8 = scmp.lt.u32.totalorder %s1122_s30, %s1299_s25 }
  0x19   : > { %p1126_p3 = pneg %p1125_p2  ;;  %p1130_p7 = por %p1129_p5, %p1128_p4 }
  0x1b   : > { %p1132_p10 = por %p1131_p8, %p1130_p7 }
  0x1d   : > { %p1133_p9 = pnand %p1132_p10, %p1126_p3 }
  0x1f   : > { %1136 = shalt.err (!%p1133_p9)
}
  0x20   : > { %s1137_s13 = scalar_lea.vmem %s1307_s27, 8192  ;;  %s1220_s14 = smov [#allocation2]  }
  0x21   : > { %p1138_p0 = scmp.ne.s32.totalorder %s1307_s27, %s1137_s13  ;;  %s1142_s16 = sshll.u32 %s1220_s14, 4  ;;  %s1143_s16 = int_to_ptr.vmem [resolvable:$false] %s1142_s16 }
  0x22   : > { %s1144_s20 = scalar_lea.vmem %s1143_s16, 16384  ;;  %p1145_p11 = scmp.lt.s32.totalorder %s1307_s27, %s1143_s16 }
  0x23   : > { %p1140_p2 = pnand %p1138_p0, %p1124_p1  ;;  %p1146_p4 = scmp.lt.s32.totalorder %s1144_s20, %s1137_s13 }
  0x25   : > { %p1141_p12 = pneg %p1140_p2  ;;  %p1147_p5 = por %p1146_p4, %p1145_p11 }
  0x27   : > { %p1148_p7 = pnand %p1147_p5, %p1141_p12 }
  0x29   : > { %1151 = shalt.err (!%p1148_p7)
}
  0x2a   : > { %s1221_s21 = smov 128   ;;  %s1222_s22 = smov 8  }
  0x2b   : > { %823 = dma.hbm_to_vmem [thread:$0]  (!%p1303_p13), %s1299_s25, 8192, %s1307_s27, %s1309_s29, %s1221_s21, %s1221_s21, %s1222_s22  }
  0x2c   : > { %p742_p9 = scmp.ge.s32.totalorder %s1218_s9, 1  ;;  %p106_p1 = scmp.lt.s32.totalorder %s1218_s9, 3 }
  0x2e   : > { %p107_p3 = pnand %p742_p9, %p106_p1 }
  0x2f   : > { %s1340_s23 = sand.u32 (!%p107_p3), 1, %s1210_s7  }
  0x30   : > { %110 = sbr.rel (%p107_p3) target bundleno = 213 (0xd5), region = 24  ;;  %s743_s24 = sshll.u32 (!%p107_p3), %s1340_s23, 9 }
  0x31   : > { %s113_s26 = scalar_lea.sflag (!%p107_p3), [#allocation3], %s1340_s23  ;;  %s1346_s30 = scalar_lea.vmem (!%p107_p3), [#allocation2], %s743_s24 }
  0x37   : > { %1197 = dma.done.wait (%p1279_p6), %s113_s26, 8192  }
  0x38   : > { %1199 = vsyncadd (%p1279_p6), %s113_s26, 4294959104  ;;  %v137_v0 = vld [vmem:[%s1346_s30] sm:$0xff]  ;;  %v138_v1 = vld [vmem:[%s1346_s30 + $0x8] sm:$0xff]  ;;  %s1372_s17 = scalar_lea.vmem [#allocation5], %s743_s24  ;;  %s815_s25 = sshll.u32 %s1257_s10, 13 }
  0x39   : > { %v139_v2 = vld [vmem:[%s1346_s30 + $0x10] sm:$0xff]  ;;  %v745_v3 = vmul.f32 -1.442695, %v137_v0  ;;  %v746_v4 = vmul.f32 -1.442695, %v138_v1  ;;  %v140_v6 = vld [vmem:[%s1346_s30 + $0x18] sm:$0xff]  ;;  %s1486_s2 = scalar_lea.hbm %s1536_s1, %s815_s25 }
  0x3a   : > { %v747_v5 = vmul.f32 -1.442695, %v139_v2  ;;  %v141_v7 = vld [vmem:[%s1346_s30 + $0x20] sm:$0xff]  ;;  %v142_v8 = vld [vmem:[%s1346_s30 + $0x28] sm:$0xff]  ;;  %v748_v9 = vmul.f32 -1.442695, %v140_v6 }
  0x3b   : > { %866 = vpow2.f32 %v745_v3  ;;  %v749_v10 = vmul.f32 -1.442695, %v141_v7  ;;  %v750_v11 = vmul.f32 -1.442695, %v142_v8  ;;  %v143_v12 = vld [vmem:[%s1346_s30 + $0x30] sm:$0xff]  ;;  %v144_v13 = vld [vmem:[%s1346_s30 + $0x38] sm:$0xff] }
  0x3c   : > { %868 = vpow2.f32 %v746_v4  ;;  %v145_v14 = vld [vmem:[%s1346_s30 + $0x40] sm:$0xff]  ;;  %v751_v15 = vmul.f32 -1.442695, %v143_v12  ;;  %v752_v16 = vmul.f32 -1.442695, %v144_v13  ;;  %v146_v17 = vld [vmem:[%s1346_s30 + $0x48] sm:$0xff] }
  0x3d   : > { %870 = vpow2.f32 %v747_v5  ;;  %v147_v18 = vld [vmem:[%s1346_s30 + $0x50] sm:$0xff]  ;;  %v753_v19 = vmul.f32 -1.442695, %v145_v14  ;;  %v148_v20 = vld [vmem:[%s1346_s30 + $0x58] sm:$0xff]  ;;  %v754_v21 = vmul.f32 -1.442695, %v146_v17 }
  0x3e   : > { %872 = vpow2.f32 %v748_v9  ;;  %v149_v22 = vld [vmem:[%s1346_s30 + $0x60] sm:$0xff]  ;;  %v755_v23 = vmul.f32 -1.442695, %v147_v18  ;;  %v756_v24 = vmul.f32 -1.442695, %v148_v20  ;;  %v150_v45 = vld [vmem:[%s1346_s30 + $0x68] sm:$0xff] }
  0x3f   : > { %874 = vpow2.f32 %v749_v10  ;;  %v757_v25 = vmul.f32 -1.442695, %v149_v22  ;;  %v151_v48 = vld [vmem:[%s1346_s30 + $0x70] sm:$0xff]  ;;  %v152_v51 = vld [vmem:[%s1346_s30 + $0x78] sm:$0xff]  ;;  %v758_v54 = vmul.f32 -1.442695, %v150_v45 }
  0x40   : > { %876 = vpow2.f32 %v750_v11  ;;  %v153_v55 = vld [vmem:[%s1346_s30 + $0x80] sm:$0xff]  ;;  %v759_v58 = vmul.f32 -1.442695, %v151_v48  ;;  %v154_v59 = vld [vmem:[%s1346_s30 + $0x88] sm:$0xff]  ;;  %v760_v61 = vmul.f32 -1.442695, %v152_v51 }
  0x41   : > { %878 = vpow2.f32 %v751_v15  ;;  %v155_v62 = vld [vmem:[%s1346_s30 + $0x90] sm:$0xff]  ;;  %v761_v0 = vmul.f32 -1.442695, %v153_v55  ;;  %v156_v1 = vld [vmem:[%s1346_s30 + $0x98] sm:$0xff]  ;;  %v762_v3 = vmul.f32 -1.442695, %v154_v59 }
  0x42   : > { %880 = vpow2.f32 %v752_v16  ;;  %v157_v4 = vld [vmem:[%s1346_s30 + $0xa0] sm:$0xff]  ;;  %v763_v6 = vmul.f32 -1.442695, %v155_v62  ;;  %v158_v7 = vld [vmem:[%s1346_s30 + $0xa8] sm:$0xff]  ;;  %v764_v9 = vmul.f32 -1.442695, %v156_v1 }
  0x43   : > { %882 = vpow2.f32 %v753_v19  ;;  %v159_v10 = vld [vmem:[%s1346_s30 + $0xb0] sm:$0xff]  ;;  %v765_v12 = vmul.f32 -1.442695, %v157_v4  ;;  %v160_v13 = vld [vmem:[%s1346_s30 + $0xb8] sm:$0xff]  ;;  %v766_v15 = vmul.f32 -1.442695, %v158_v7 }
  0x44   : > { %884 = vpow2.f32 %v754_v21  ;;  %v161_v16 = vld [vmem:[%s1346_s30 + $0xc0] sm:$0xff]  ;;  %v767_v18 = vmul.f32 -1.442695, %v159_v10  ;;  %v162_v19 = vld [vmem:[%s1346_s30 + $0xc8] sm:$0xff]  ;;  %v768_v21 = vmul.f32 -1.442695, %v160_v13 }
  0x45   : > { %v867_v26 = vpop.eup %866  ;;  %886 = vpow2.f32 %v755_v23  ;;  %v769_v23 = vmul.f32 -1.442695, %v161_v16  ;;  %s663_s27 = sshll.u32 %s1372_s17, 4  ;;  %s650_s10 = scalar_lea.sflag [#allocation4], %s1340_s23  ;;  %s1489_s27 = int_to_ptr.vmem [resolvable:$true] %s663_s27 }
  0x46   : > { %v869_v27 = vpop.eup %868  ;;  %v393_v28 = vadd.f32 1.0, %v867_v26  ;;  %888 = vpow2.f32 %v756_v24  ;;  %s1152_s3 = scalar_lea.vmem %s1489_s27, 8192  ;;  %p1543_p11 = scmp.ne.s32.totalorder %s1540_s18, 0 }
  0x47   : > { %v871_v29 = vpop.eup %870  ;;  %v394_v30 = vadd.f32 1.0, %v869_v27  ;;  %890 = vpow2.f32 %v757_v25  ;;  %v770_v25 = vmul.f32 -1.442695, %v162_v19  ;;  %p1153_p6 = scmp.ne.s32.totalorder %s1489_s27, %s1152_s3  ;;  %s1223_s4 = smov [#allocation5]  }
  0x48   : > { %v873_v31 = vpop.eup %872  ;;  %892 = vrcp.f32 %v393_v28  ;;  %v395_v32 = vadd.f32 1.0, %v871_v29  ;;  %s1156_s5 = sshll.u32 %s1223_s4, 4  ;;  %s1157_s5 = int_to_ptr.vmem [resolvable:$false] %s1156_s5 }
  0x49   : > { %v875_v33 = vpop.eup %874  ;;  %894 = vrcp.f32 %v394_v30  ;;  %v396_v34 = vadd.f32 1.0, %v873_v31  ;;  %p1154_p12 = pnand %p1153_p6, %p1543_p11  ;;  %s1158_s11 = scalar_lea.vmem %s1157_s5, 16384 }
  0x4a   : > { %v877_v35 = vpop.eup %876  ;;  %896 = vrcp.f32 %v395_v32  ;;  %v397_v36 = vadd.f32 1.0, %v875_v33  ;;  %p1159_p8 = scmp.lt.s32.totalorder %s1489_s27, %s1157_s5  ;;  %p1160_p10 = scmp.lt.s32.totalorder %s1158_s11, %s1152_s3 }
  0x4b   : > { %v879_v37 = vpop.eup %878  ;;  %898 = vrcp.f32 %v396_v34  ;;  %v398_v38 = vadd.f32 1.0, %v877_v35  ;;  %p1155_p13 = pneg %p1154_p12 }
  0x4c   : > { %v881_v39 = vpop.eup %880  ;;  %900 = vrcp.f32 %v397_v36  ;;  %v399_v40 = vadd.f32 1.0, %v879_v37  ;;  %p1161_p0 = por %p1160_p10, %p1159_p8 }
  0x4d   : > { %v883_v41 = vpop.eup %882  ;;  %902 = vrcp.f32 %v398_v38  ;;  %v400_v42 = vadd.f32 1.0, %v881_v39 }
  0x4e   : > { %v885_v43 = vpop.eup %884  ;;  %904 = vrcp.f32 %v399_v40  ;;  %v401_v44 = vadd.f32 1.0, %v883_v41  ;;  %p1162_p2 = pnand %p1161_p0, %p1155_p13 }
  0x4f   : > { %v887_v46 = vpop.eup %886  ;;  %906 = vrcp.f32 %v400_v42  ;;  %v402_v47 = vadd.f32 1.0, %v885_v43 }
  0x50   : > { %v889_v49 = vpop.eup %888  ;;  %908 = vrcp.f32 %v401_v44  ;;  %v403_v50 = vadd.f32 1.0, %v887_v46  ;;  %v163_v46 = vld [vmem:[%s1346_s30 + $0xd0] sm:$0xff] }
  0x51   : > { %v891_v52 = vpop.eup %890  ;;  %910 = vrcp.f32 %v402_v47  ;;  %v404_v53 = vadd.f32 1.0, %v889_v49  ;;  %v164_v49 = vld [vmem:[%s1346_s30 + $0xd8] sm:$0xff]  ;;  %v771_v55 = vmul.f32 -1.442695, %v163_v46 }
  0x52   : > { %v893_v56 = vpop.eup %892  ;;  %912 = vrcp.f32 %v403_v50  ;;  %v405_v57 = vadd.f32 1.0, %v891_v52  ;;  %v165_v52 = vld [vmem:[%s1346_s30 + $0xe0] sm:$0xff]  ;;  %v772_v59 = vmul.f32 -1.442695, %v164_v49 }
  0x53   : > { %v895_v60 = vpop.eup %894  ;;  %585 = vst [vmem:[%s1372_s17] sm:$0xff] %v893_v56  ;;  %914 = vrcp.f32 %v404_v53  ;;  %v166_v56 = vld [vmem:[%s1346_s30 + $0xe8] sm:$0xff]  ;;  %v773_v62 = vmul.f32 -1.442695, %v165_v52 }
  0x54   : > { %v897_v63 = vpop.eup %896  ;;  %586 = vst [vmem:[%s1372_s17 + $0x8] sm:$0xff] %v895_v60  ;;  %916 = vrcp.f32 %v405_v57  ;;  %v167_v60 = vld [vmem:[%s1346_s30 + $0xf0] sm:$0xff]  ;;  %v774_v1 = vmul.f32 -1.442695, %v166_v56 }
  0x55   : > { %v899_v2 = vpop.eup %898  ;;  %587 = vst [vmem:[%s1372_s17 + $0x10] sm:$0xff] %v897_v63  ;;  %918 = vpow2.f32 %v758_v54  ;;  %v168_v63 = vld [vmem:[%s1346_s30 + $0xf8] sm:$0xff]  ;;  %v775_v4 = vmul.f32 -1.442695, %v167_v60 }
  0x56   : > { %v901_v5 = vpop.eup %900  ;;  %588 = vst [vmem:[%s1372_s17 + $0x18] sm:$0xff] %v899_v2  ;;  %920 = vpow2.f32 %v759_v58  ;;  %v169_v2 = vld [vmem:[%s1346_s30 + $0x100] sm:$0xff]  ;;  %v776_v7 = vmul.f32 -1.442695, %v168_v63 }
  0x57   : > { %v903_v8 = vpop.eup %902  ;;  %589 = vst [vmem:[%s1372_s17 + $0x20] sm:$0xff] %v901_v5  ;;  %922 = vpow2.f32 %v760_v61  ;;  %v170_v5 = vld [vmem:[%s1346_s30 + $0x108] sm:$0xff]  ;;  %v777_v10 = vmul.f32 -1.442695, %v169_v2 }
  0x58   : > { %v905_v11 = vpop.eup %904  ;;  %590 = vst [vmem:[%s1372_s17 + $0x28] sm:$0xff] %v903_v8  ;;  %924 = vpow2.f32 %v761_v0  ;;  %v171_v8 = vld [vmem:[%s1346_s30 + $0x110] sm:$0xff]  ;;  %v778_v13 = vmul.f32 -1.442695, %v170_v5 }
  0x59   : > { %v907_v14 = vpop.eup %906  ;;  %591 = vst [vmem:[%s1372_s17 + $0x30] sm:$0xff] %v905_v11  ;;  %926 = vpow2.f32 %v762_v3  ;;  %v172_v11 = vld [vmem:[%s1346_s30 + $0x118] sm:$0xff]  ;;  %v779_v16 = vmul.f32 -1.442695, %v171_v8 }
  0x5a   : > { %v909_v17 = vpop.eup %908  ;;  %592 = vst [vmem:[%s1372_s17 + $0x38] sm:$0xff] %v907_v14  ;;  %928 = vpow2.f32 %v763_v6  ;;  %v173_v14 = vld [vmem:[%s1346_s30 + $0x120] sm:$0xff]  ;;  %v780_v19 = vmul.f32 -1.442695, %v172_v11 }
  0x5b   : > { %v911_v20 = vpop.eup %910  ;;  %593 = vst [vmem:[%s1372_s17 + $0x40] sm:$0xff] %v909_v17  ;;  %930 = vpow2.f32 %v764_v9  ;;  %v174_v17 = vld [vmem:[%s1346_s30 + $0x128] sm:$0xff] }
  0x5c   : > { %v913_v22 = vpop.eup %912  ;;  %594 = vst [vmem:[%s1372_s17 + $0x48] sm:$0xff] %v911_v20  ;;  %932 = vpow2.f32 %v765_v12  ;;  %v175_v20 = vld [vmem:[%s1346_s30 + $0x130] sm:$0xff] }
  0x5d   : > { %v915_v24 = vpop.eup %914  ;;  %595 = vst [vmem:[%s1372_s17 + $0x50] sm:$0xff] %v913_v22  ;;  %934 = vpow2.f32 %v766_v15  ;;  %v781_v22 = vmul.f32 -1.442695, %v173_v14 }
  0x5e   : > { %v917_v26 = vpop.eup %916  ;;  %596 = vst [vmem:[%s1372_s17 + $0x58] sm:$0xff] %v915_v24  ;;  %936 = vpow2.f32 %v767_v18  ;;  %v782_v24 = vmul.f32 -1.442695, %v174_v17 }
  0x5f   : > { %v919_v27 = vpop.eup %918  ;;  %597 = vst [vmem:[%s1372_s17 + $0x60] sm:$0xff] %v917_v26  ;;  %938 = vpow2.f32 %v768_v21  ;;  %v783_v26 = vmul.f32 -1.442695, %v175_v20 }
  0x60   : > { %v921_v28 = vpop.eup %920  ;;  %v406_v29 = vadd.f32 1.0, %v919_v27  ;;  %940 = vpow2.f32 %v769_v23 }
  0x61   : > { %v923_v30 = vpop.eup %922  ;;  %v407_v31 = vadd.f32 1.0, %v921_v28  ;;  %942 = vpow2.f32 %v770_v25 }
  0x62   : > { %v925_v32 = vpop.eup %924  ;;  %944 = vrcp.f32 %v406_v29  ;;  %v408_v33 = vadd.f32 1.0, %v923_v30 }
  0x63   : > { %v927_v34 = vpop.eup %926  ;;  %946 = vrcp.f32 %v407_v31  ;;  %v409_v35 = vadd.f32 1.0, %v925_v32 }
  0x64   : > { %v929_v36 = vpop.eup %928  ;;  %948 = vrcp.f32 %v408_v33  ;;  %v410_v37 = vadd.f32 1.0, %v927_v34 }
  0x65   : > { %v931_v38 = vpop.eup %930  ;;  %950 = vrcp.f32 %v409_v35  ;;  %v411_v39 = vadd.f32 1.0, %v929_v36 }
  0x66   : > { %v933_v40 = vpop.eup %932  ;;  %952 = vrcp.f32 %v410_v37  ;;  %v412_v41 = vadd.f32 1.0, %v931_v38 }
  0x67   : > { %v935_v42 = vpop.eup %934  ;;  %954 = vrcp.f32 %v411_v39  ;;  %v413_v43 = vadd.f32 1.0, %v933_v40 }
  0x68   : > { %v937_v44 = vpop.eup %936  ;;  %956 = vrcp.f32 %v412_v41  ;;  %v414_v45 = vadd.f32 1.0, %v935_v42 }
  0x69   : > { %v939_v47 = vpop.eup %938  ;;  %958 = vrcp.f32 %v413_v43  ;;  %v415_v48 = vadd.f32 1.0, %v937_v44 }
  0x6a   : > { %v941_v50 = vpop.eup %940  ;;  %960 = vrcp.f32 %v414_v45  ;;  %v416_v51 = vadd.f32 1.0, %v939_v47  ;;  %v176_v47 = vld [vmem:[%s1346_s30 + $0x138] sm:$0xff] }
  0x6b   : > { %v943_v53 = vpop.eup %942  ;;  %962 = vrcp.f32 %v415_v48  ;;  %v417_v54 = vadd.f32 1.0, %v941_v50  ;;  %v177_v50 = vld [vmem:[%s1346_s30 + $0x140] sm:$0xff]  ;;  %v784_v56 = vmul.f32 -1.442695, %v176_v47 }
  0x6c   : > { %v945_v57 = vpop.eup %944  ;;  %964 = vrcp.f32 %v416_v51  ;;  %v418_v58 = vadd.f32 1.0, %v943_v53  ;;  %v178_v53 = vld [vmem:[%s1346_s30 + $0x148] sm:$0xff]  ;;  %v785_v60 = vmul.f32 -1.442695, %v177_v50 }
  0x6d   : > { %v947_v61 = vpop.eup %946  ;;  %598 = vst [vmem:[%s1372_s17 + $0x68] sm:$0xff] %v945_v57  ;;  %966 = vrcp.f32 %v417_v54  ;;  %v179_v57 = vld [vmem:[%s1346_s30 + $0x150] sm:$0xff]  ;;  %v786_v63 = vmul.f32 -1.442695, %v178_v53 }
  0x6e   : > { %v949_v0 = vpop.eup %948  ;;  %599 = vst [vmem:[%s1372_s17 + $0x70] sm:$0xff] %v947_v61  ;;  %968 = vrcp.f32 %v418_v58  ;;  %v180_v61 = vld [vmem:[%s1346_s30 + $0x158] sm:$0xff]  ;;  %v787_v2 = vmul.f32 -1.442695, %v179_v57 }
  0x6f   : > { %v951_v3 = vpop.eup %950  ;;  %600 = vst [vmem:[%s1372_s17 + $0x78] sm:$0xff] %v949_v0  ;;  %970 = vpow2.f32 %v771_v55  ;;  %v181_v0 = vld [vmem:[%s1346_s30 + $0x160] sm:$0xff]  ;;  %v788_v5 = vmul.f32 -1.442695, %v180_v61 }
  0x70   : > { %v953_v6 = vpop.eup %952  ;;  %601 = vst [vmem:[%s1372_s17 + $0x80] sm:$0xff] %v951_v3  ;;  %972 = vpow2.f32 %v772_v59  ;;  %v182_v3 = vld [vmem:[%s1346_s30 + $0x168] sm:$0xff]  ;;  %v789_v8 = vmul.f32 -1.442695, %v181_v0 }
  0x71   : > { %v955_v9 = vpop.eup %954  ;;  %602 = vst [vmem:[%s1372_s17 + $0x88] sm:$0xff] %v953_v6  ;;  %974 = vpow2.f32 %v773_v62  ;;  %v183_v6 = vld [vmem:[%s1346_s30 + $0x170] sm:$0xff]  ;;  %v790_v11 = vmul.f32 -1.442695, %v182_v3 }
  0x72   : > { %v957_v12 = vpop.eup %956  ;;  %603 = vst [vmem:[%s1372_s17 + $0x90] sm:$0xff] %v955_v9  ;;  %976 = vpow2.f32 %v774_v1  ;;  %v184_v9 = vld [vmem:[%s1346_s30 + $0x178] sm:$0xff]  ;;  %v791_v14 = vmul.f32 -1.442695, %v183_v6 }
  0x73   : > { %v959_v15 = vpop.eup %958  ;;  %604 = vst [vmem:[%s1372_s17 + $0x98] sm:$0xff] %v957_v12  ;;  %978 = vpow2.f32 %v775_v4  ;;  %v185_v12 = vld [vmem:[%s1346_s30 + $0x180] sm:$0xff]  ;;  %v792_v17 = vmul.f32 -1.442695, %v184_v9 }
  0x74   : > { %v961_v18 = vpop.eup %960  ;;  %605 = vst [vmem:[%s1372_s17 + $0xa0] sm:$0xff] %v959_v15  ;;  %980 = vpow2.f32 %v776_v7  ;;  %v186_v15 = vld [vmem:[%s1346_s30 + $0x188] sm:$0xff]  ;;  %v793_v20 = vmul.f32 -1.442695, %v185_v12 }
  0x75   : > { %v963_v21 = vpop.eup %962  ;;  %606 = vst [vmem:[%s1372_s17 + $0xa8] sm:$0xff] %v961_v18  ;;  %982 = vpow2.f32 %v777_v10  ;;  %v187_v18 = vld [vmem:[%s1346_s30 + $0x190] sm:$0xff] }
  0x76   : > { %v965_v23 = vpop.eup %964  ;;  %607 = vst [vmem:[%s1372_s17 + $0xb0] sm:$0xff] %v963_v21  ;;  %984 = vpow2.f32 %v778_v13  ;;  %v188_v21 = vld [vmem:[%s1346_s30 + $0x198] sm:$0xff] }
  0x77   : > { %v967_v25 = vpop.eup %966  ;;  %608 = vst [vmem:[%s1372_s17 + $0xb8] sm:$0xff] %v965_v23  ;;  %986 = vpow2.f32 %v779_v16  ;;  %v794_v23 = vmul.f32 -1.442695, %v186_v15 }
  0x78   : > { %v969_v27 = vpop.eup %968  ;;  %609 = vst [vmem:[%s1372_s17 + $0xc0] sm:$0xff] %v967_v25  ;;  %988 = vpow2.f32 %v780_v19  ;;  %v795_v25 = vmul.f32 -1.442695, %v187_v18 }
  0x79   : > { %v971_v28 = vpop.eup %970  ;;  %610 = vst [vmem:[%s1372_s17 + $0xc8] sm:$0xff] %v969_v27  ;;  %990 = vpow2.f32 %v781_v22  ;;  %v796_v27 = vmul.f32 -1.442695, %v188_v21 }
  0x7a   : > { %v973_v29 = vpop.eup %972  ;;  %v419_v30 = vadd.f32 1.0, %v971_v28  ;;  %992 = vpow2.f32 %v782_v24 }
  0x7b   : > { %v975_v31 = vpop.eup %974  ;;  %v420_v32 = vadd.f32 1.0, %v973_v29  ;;  %994 = vpow2.f32 %v783_v26 }
  0x7c   : > { %v977_v33 = vpop.eup %976  ;;  %996 = vrcp.f32 %v419_v30  ;;  %v421_v34 = vadd.f32 1.0, %v975_v31 }
  0x7d   : > { %v979_v35 = vpop.eup %978  ;;  %998 = vrcp.f32 %v420_v32  ;;  %v422_v36 = vadd.f32 1.0, %v977_v33 }
  0x7e   : > { %v981_v37 = vpop.eup %980  ;;  %1000 = vrcp.f32 %v421_v34  ;;  %v423_v38 = vadd.f32 1.0, %v979_v35 }
  0x7f   : > { %v983_v39 = vpop.eup %982  ;;  %1002 = vrcp.f32 %v422_v36  ;;  %v424_v40 = vadd.f32 1.0, %v981_v37 }
  0x80   : > { %v985_v41 = vpop.eup %984  ;;  %1004 = vrcp.f32 %v423_v38  ;;  %v425_v42 = vadd.f32 1.0, %v983_v39 }
  0x81   : > { %v987_v43 = vpop.eup %986  ;;  %1006 = vrcp.f32 %v424_v40  ;;  %v426_v44 = vadd.f32 1.0, %v985_v41 }
  0x82   : > { %v989_v45 = vpop.eup %988  ;;  %1008 = vrcp.f32 %v425_v42  ;;  %v427_v46 = vadd.f32 1.0, %v987_v43 }
  0x83   : > { %v991_v48 = vpop.eup %990  ;;  %1010 = vrcp.f32 %v426_v44  ;;  %v428_v49 = vadd.f32 1.0, %v989_v45 }
  0x84   : > { %v993_v51 = vpop.eup %992  ;;  %1012 = vrcp.f32 %v427_v46  ;;  %v429_v52 = vadd.f32 1.0, %v991_v48  ;;  %v189_v48 = vld [vmem:[%s1346_s30 + $0x1a0] sm:$0xff] }
  0x85   : > { %v995_v54 = vpop.eup %994  ;;  %1014 = vrcp.f32 %v428_v49  ;;  %v430_v55 = vadd.f32 1.0, %v993_v51  ;;  %v190_v51 = vld [vmem:[%s1346_s30 + $0x1a8] sm:$0xff]  ;;  %v797_v57 = vmul.f32 -1.442695, %v189_v48 }
  0x86   : > { %v997_v58 = vpop.eup %996  ;;  %1016 = vrcp.f32 %v429_v52  ;;  %v431_v59 = vadd.f32 1.0, %v995_v54  ;;  %v191_v54 = vld [vmem:[%s1346_s30 + $0x1b0] sm:$0xff]  ;;  %v798_v61 = vmul.f32 -1.442695, %v190_v51 }
  0x87   : > { %v999_v62 = vpop.eup %998  ;;  %611 = vst [vmem:[%s1372_s17 + $0xd0] sm:$0xff] %v997_v58  ;;  %1018 = vrcp.f32 %v430_v55  ;;  %v192_v58 = vld [vmem:[%s1346_s30 + $0x1b8] sm:$0xff]  ;;  %v799_v0 = vmul.f32 -1.442695, %v191_v54 }
  0x88   : > { %v1001_v1 = vpop.eup %1000  ;;  %612 = vst [vmem:[%s1372_s17 + $0xd8] sm:$0xff] %v999_v62  ;;  %1020 = vrcp.f32 %v431_v59  ;;  %v193_v62 = vld [vmem:[%s1346_s30 + $0x1c0] sm:$0xff]  ;;  %v800_v3 = vmul.f32 -1.442695, %v192_v58 }
  0x89   : > { %v1003_v4 = vpop.eup %1002  ;;  %613 = vst [vmem:[%s1372_s17 + $0xe0] sm:$0xff] %v1001_v1  ;;  %1022 = vpow2.f32 %v784_v56  ;;  %v194_v1 = vld [vmem:[%s1346_s30 + $0x1c8] sm:$0xff]  ;;  %v801_v6 = vmul.f32 -1.442695, %v193_v62 }
  0x8a   : > { %v1005_v7 = vpop.eup %1004  ;;  %614 = vst [vmem:[%s1372_s17 + $0xe8] sm:$0xff] %v1003_v4  ;;  %1024 = vpow2.f32 %v785_v60  ;;  %v195_v4 = vld [vmem:[%s1346_s30 + $0x1d0] sm:$0xff]  ;;  %v802_v9 = vmul.f32 -1.442695, %v194_v1 }
  0x8b   : > { %v1007_v10 = vpop.eup %1006  ;;  %615 = vst [vmem:[%s1372_s17 + $0xf0] sm:$0xff] %v1005_v7  ;;  %1026 = vpow2.f32 %v786_v63  ;;  %v196_v7 = vld [vmem:[%s1346_s30 + $0x1d8] sm:$0xff]  ;;  %v803_v12 = vmul.f32 -1.442695, %v195_v4 }
  0x8c   : > { %v1009_v13 = vpop.eup %1008  ;;  %616 = vst [vmem:[%s1372_s17 + $0xf8] sm:$0xff] %v1007_v10  ;;  %1028 = vpow2.f32 %v787_v2  ;;  %v197_v10 = vld [vmem:[%s1346_s30 + $0x1e0] sm:$0xff]  ;;  %v804_v15 = vmul.f32 -1.442695, %v196_v7 }
  0x8d   : > { %v1011_v16 = vpop.eup %1010  ;;  %617 = vst [vmem:[%s1372_s17 + $0x100] sm:$0xff] %v1009_v13  ;;  %1030 = vpow2.f32 %v788_v5  ;;  %v198_v13 = vld [vmem:[%s1346_s30 + $0x1e8] sm:$0xff]  ;;  %v805_v18 = vmul.f32 -1.442695, %v197_v10 }
  0x8e   : > { %v1013_v19 = vpop.eup %1012  ;;  %618 = vst [vmem:[%s1372_s17 + $0x108] sm:$0xff] %v1011_v16  ;;  %1032 = vpow2.f32 %v789_v8  ;;  %v199_v16 = vld [vmem:[%s1346_s30 + $0x1f0] sm:$0xff]  ;;  %v806_v21 = vmul.f32 -1.442695, %v198_v13 }
  0x8f   : > { %v1015_v22 = vpop.eup %1014  ;;  %619 = vst [vmem:[%s1372_s17 + $0x110] sm:$0xff] %v1013_v19  ;;  %1034 = vpow2.f32 %v790_v11  ;;  %v200_v19 = vld [vmem:[%s1346_s30 + $0x1f8] sm:$0xff] }
  0x90   : > { %v1017_v24 = vpop.eup %1016  ;;  %620 = vst [vmem:[%s1372_s17 + $0x118] sm:$0xff] %v1015_v22  ;;  %1036 = vpow2.f32 %v791_v14 }
  0x91   : > { %v1019_v26 = vpop.eup %1018  ;;  %621 = vst [vmem:[%s1372_s17 + $0x120] sm:$0xff] %v1017_v24  ;;  %1038 = vpow2.f32 %v792_v17 }
  0x92   : > { %v1021_v28 = vpop.eup %1020  ;;  %622 = vst [vmem:[%s1372_s17 + $0x128] sm:$0xff] %v1019_v26  ;;  %1040 = vpow2.f32 %v793_v20 }
  0x93   : > { %v1023_v29 = vpop.eup %1022  ;;  %623 = vst [vmem:[%s1372_s17 + $0x130] sm:$0xff] %v1021_v28  ;;  %1042 = vpow2.f32 %v794_v23  ;;  %v807_v23 = vmul.f32 -1.442695, %v199_v16 }
  0x94   : > { %v1025_v30 = vpop.eup %1024  ;;  %v432_v31 = vadd.f32 1.0, %v1023_v29  ;;  %1044 = vpow2.f32 %v795_v25  ;;  %v808_v25 = vmul.f32 -1.442695, %v200_v19 }
  0x95   : > { %v1027_v32 = vpop.eup %1026  ;;  %v433_v33 = vadd.f32 1.0, %v1025_v30  ;;  %1046 = vpow2.f32 %v796_v27 }
  0x96   : > { %v1029_v34 = vpop.eup %1028  ;;  %1048 = vrcp.f32 %v432_v31  ;;  %v434_v35 = vadd.f32 1.0, %v1027_v32 }
  0x97   : > { %v1031_v36 = vpop.eup %1030  ;;  %1050 = vrcp.f32 %v433_v33  ;;  %v435_v37 = vadd.f32 1.0, %v1029_v34 }
  0x98   : > { %v1033_v38 = vpop.eup %1032  ;;  %1052 = vrcp.f32 %v434_v35  ;;  %v436_v39 = vadd.f32 1.0, %v1031_v36 }
  0x99   : > { %v1035_v40 = vpop.eup %1034  ;;  %1054 = vrcp.f32 %v435_v37  ;;  %v437_v41 = vadd.f32 1.0, %v1033_v38 }
  0x9a   : > { %v1037_v42 = vpop.eup %1036  ;;  %1056 = vrcp.f32 %v436_v39  ;;  %v438_v43 = vadd.f32 1.0, %v1035_v40 }
  0x9b   : > { %v1039_v44 = vpop.eup %1038  ;;  %1058 = vrcp.f32 %v437_v41  ;;  %v439_v45 = vadd.f32 1.0, %v1037_v42 }
  0x9c   : > { %v1041_v46 = vpop.eup %1040  ;;  %1060 = vrcp.f32 %v438_v43  ;;  %v440_v47 = vadd.f32 1.0, %v1039_v44 }
  0x9d   : > { %v1043_v49 = vpop.eup %1042  ;;  %1062 = vrcp.f32 %v439_v45  ;;  %v441_v50 = vadd.f32 1.0, %v1041_v46 }
  0x9e   : > { %v1045_v52 = vpop.eup %1044  ;;  %1064 = vrcp.f32 %v440_v47  ;;  %v442_v53 = vadd.f32 1.0, %v1043_v49 }
  0x9f   : > { %v1047_v55 = vpop.eup %1046  ;;  %1066 = vrcp.f32 %v441_v50  ;;  %v443_v56 = vadd.f32 1.0, %v1045_v52 }
  0xa0   : > { %v1049_v59 = vpop.eup %1048  ;;  %1068 = vrcp.f32 %v442_v53  ;;  %v444_v60 = vadd.f32 1.0, %v1047_v55 }
  0xa1   : > { %v1051_v63 = vpop.eup %1050  ;;  %624 = vst [vmem:[%s1372_s17 + $0x138] sm:$0xff] %v1049_v59  ;;  %1070 = vrcp.f32 %v443_v56 }
  0xa2   : > { %v1053_v2 = vpop.eup %1052  ;;  %625 = vst [vmem:[%s1372_s17 + $0x140] sm:$0xff] %v1051_v63  ;;  %1072 = vrcp.f32 %v444_v60 }
  0xa3   : > { %v1055_v5 = vpop.eup %1054  ;;  %626 = vst [vmem:[%s1372_s17 + $0x148] sm:$0xff] %v1053_v2  ;;  %1074 = vpow2.f32 %v797_v57 }
  0xa4   : > { %v1057_v8 = vpop.eup %1056  ;;  %627 = vst [vmem:[%s1372_s17 + $0x150] sm:$0xff] %v1055_v5  ;;  %1076 = vpow2.f32 %v798_v61 }
  0xa5   : > { %v1059_v11 = vpop.eup %1058  ;;  %628 = vst [vmem:[%s1372_s17 + $0x158] sm:$0xff] %v1057_v8  ;;  %1078 = vpow2.f32 %v799_v0 }
  0xa6   : > { %v1061_v14 = vpop.eup %1060  ;;  %629 = vst [vmem:[%s1372_s17 + $0x160] sm:$0xff] %v1059_v11  ;;  %1080 = vpow2.f32 %v800_v3 }
  0xa7   : > { %v1063_v17 = vpop.eup %1062  ;;  %630 = vst [vmem:[%s1372_s17 + $0x168] sm:$0xff] %v1061_v14  ;;  %1082 = vpow2.f32 %v801_v6 }
  0xa8   : > { %v1065_v20 = vpop.eup %1064  ;;  %631 = vst [vmem:[%s1372_s17 + $0x170] sm:$0xff] %v1063_v17  ;;  %1084 = vpow2.f32 %v802_v9 }
  0xa9   : > { %v1067_v22 = vpop.eup %1066  ;;  %632 = vst [vmem:[%s1372_s17 + $0x178] sm:$0xff] %v1065_v20  ;;  %1086 = vpow2.f32 %v803_v12 }
  0xaa   : > { %v1069_v24 = vpop.eup %1068  ;;  %633 = vst [vmem:[%s1372_s17 + $0x180] sm:$0xff] %v1067_v22  ;;  %1088 = vpow2.f32 %v804_v15 }
  0xab   : > { %v1071_v26 = vpop.eup %1070  ;;  %634 = vst [vmem:[%s1372_s17 + $0x188] sm:$0xff] %v1069_v24  ;;  %1090 = vpow2.f32 %v805_v18 }
  0xac   : > { %v1073_v27 = vpop.eup %1072  ;;  %635 = vst [vmem:[%s1372_s17 + $0x190] sm:$0xff] %v1071_v26  ;;  %1092 = vpow2.f32 %v806_v21 }
  0xad   : > { %v1075_v28 = vpop.eup %1074  ;;  %636 = vst [vmem:[%s1372_s17 + $0x198] sm:$0xff] %v1073_v27  ;;  %1094 = vpow2.f32 %v807_v23 }
  0xae   : > { %v1077_v29 = vpop.eup %1076  ;;  %v445_v30 = vadd.f32 1.0, %v1075_v28  ;;  %1096 = vpow2.f32 %v808_v25 }
  0xaf   : > { %v1079_v31 = vpop.eup %1078  ;;  %v446_v32 = vadd.f32 1.0, %v1077_v29 }
  0xb0   : > { %v1081_v33 = vpop.eup %1080  ;;  %1098 = vrcp.f32 %v445_v30  ;;  %v447_v34 = vadd.f32 1.0, %v1079_v31 }
  0xb1   : > { %v1083_v35 = vpop.eup %1082  ;;  %1100 = vrcp.f32 %v446_v32  ;;  %v448_v36 = vadd.f32 1.0, %v1081_v33 }
  0xb2   : > { %v1085_v37 = vpop.eup %1084  ;;  %1102 = vrcp.f32 %v447_v34  ;;  %v449_v38 = vadd.f32 1.0, %v1083_v35 }
  0xb3   : > { %v1087_v39 = vpop.eup %1086  ;;  %1104 = vrcp.f32 %v448_v36  ;;  %v450_v40 = vadd.f32 1.0, %v1085_v37 }
  0xb4   : > { %v1089_v41 = vpop.eup %1088  ;;  %1106 = vrcp.f32 %v449_v38  ;;  %v451_v42 = vadd.f32 1.0, %v1087_v39 }
  0xb5   : > { %v1091_v43 = vpop.eup %1090  ;;  %1108 = vrcp.f32 %v450_v40  ;;  %v452_v44 = vadd.f32 1.0, %v1089_v41 }
  0xb6   : > { %v1093_v45 = vpop.eup %1092  ;;  %1110 = vrcp.f32 %v451_v42  ;;  %v453_v46 = vadd.f32 1.0, %v1091_v43 }
  0xb7   : > { %v1095_v47 = vpop.eup %1094  ;;  %1112 = vrcp.f32 %v452_v44  ;;  %v454_v48 = vadd.f32 1.0, %v1093_v45 }
  0xb8   : > { %v1097_v49 = vpop.eup %1096  ;;  %1114 = vrcp.f32 %v453_v46  ;;  %v455_v50 = vadd.f32 1.0, %v1095_v47 }
  0xb9   : > { %1116 = vrcp.f32 %v454_v48  ;;  %v456_v51 = vadd.f32 1.0, %v1097_v49 }
  0xba   : > { %v1099_v52 = vpop.eup %1098  ;;  %1118 = vrcp.f32 %v455_v50 }
  0xbb   : > { %v1101_v53 = vpop.eup %1100  ;;  %637 = vst [vmem:[%s1372_s17 + $0x1a0] sm:$0xff] %v1099_v52  ;;  %1120 = vrcp.f32 %v456_v51 }
  0xbc   : > { %v1103_v54 = vpop.eup %1102  ;;  %638 = vst [vmem:[%s1372_s17 + $0x1a8] sm:$0xff] %v1101_v53 }
  0xbd   : > { %v1105_v55 = vpop.eup %1104  ;;  %639 = vst [vmem:[%s1372_s17 + $0x1b0] sm:$0xff] %v1103_v54 }
  0xbe   : > { %v1107_v56 = vpop.eup %1106  ;;  %640 = vst [vmem:[%s1372_s17 + $0x1b8] sm:$0xff] %v1105_v55 }
  0xbf   : > { %v1109_v57 = vpop.eup %1108  ;;  %641 = vst [vmem:[%s1372_s17 + $0x1c0] sm:$0xff] %v1107_v56 }
  0xc0   : > { %v1111_v58 = vpop.eup %1110  ;;  %642 = vst [vmem:[%s1372_s17 + $0x1c8] sm:$0xff] %v1109_v57 }
  0xc1   : > { %v1113_v59 = vpop.eup %1112  ;;  %643 = vst [vmem:[%s1372_s17 + $0x1d0] sm:$0xff] %v1111_v58 }
  0xc2   : > { %v1115_v60 = vpop.eup %1114  ;;  %644 = vst [vmem:[%s1372_s17 + $0x1d8] sm:$0xff] %v1113_v59 }
  0xc3   : > { %v1117_v61 = vpop.eup %1116  ;;  %645 = vst [vmem:[%s1372_s17 + $0x1e0] sm:$0xff] %v1115_v60 }
  0xc4   : > { %v1119_v62 = vpop.eup %1118  ;;  %646 = vst [vmem:[%s1372_s17 + $0x1e8] sm:$0xff] %v1117_v61 }
  0xc5   : > { %v1121_v63 = vpop.eup %1120  ;;  %647 = vst [vmem:[%s1372_s17 + $0x1f0] sm:$0xff] %v1119_v62 }
  0xc6   : > { %648 = vst [vmem:[%s1372_s17 + $0x1f8] sm:$0xff] %v1121_v63 }
  0xc7   : > { %1165 = shalt.err (!%p1162_p2)
}
  0xc8   : > { %s1166_s13 = scalar_lea.hbm %s1486_s2, 8192  ;;  %s1170_s20 = scalar_lea.hbm %s1536_s1, 16384 }
  0xc9   : > { %p1167_p4 = scmp.ne.s32.totalorder %s1486_s2, %s1166_s13  ;;  %p1171_p9 = scmp.lt.u32.totalorder %s1486_s2, %s1536_s1 }
  0xca   : > { %p1172_p1 = scmp.lt.u32.totalorder %s1170_s20, %s1166_s13  ;;  %p1174_p6 = scmp.lt.u32.totalorder %s1166_s13, %s1486_s2 }
  0xcb   : > { %p1168_p5 = pnand %p1167_p4, %p1543_p11 }
  0xcc   : > { %p1173_p3 = por %p1172_p1, %p1171_p9 }
  0xcd   : > { %p1169_p7 = pneg %p1168_p5 }
  0xce   : > { %p1175_p12 = por %p1174_p6, %p1173_p3 }
  0xd0   : > { %p1176_p13 = pnand %p1175_p12, %p1169_p7 }
  0xd2   : > { %1179 = shalt.err (!%p1176_p13)
}
  0xd3   : > { %s1224_s24 = smov 128   ;;  %s1225_s26 = smov 8  }
  0xd4   : > { %818 = dma.vmem_to_hbm [thread:$0]  (%p1543_p11), %s1489_s27, 8192, %s1486_s2, %s650_s10, %s1224_s24, %s1224_s24, %s1225_s26  }
  0xd5 PF: > { %s678_s30 = sand.u32 1, %s1206_s6   ;;  %p1544_p8 = scmp.ne.s32.totalorder %s1541_s19, 0 }
  0xd6   : > { %p1545_p10 = scmp.ge.s32.totalorder %s1218_s9, 2  ;;  %s679_s17 = scalar_lea.sflag [#allocation4], %s678_s30 }
  0xd8   : > { %p825_p0 = pnand %p1545_p10, %p1544_p8 }
  0xda   : > { %1201 = dma.done.wait (!%p825_p0), %s679_s17, 8192  }
  0xdb   : > { %1203 = vsyncadd (!%p825_p0), %s679_s17, 4294959104  ;;  %p14_p2 = scmp.ge.s32.totalorder %s1261_s12, 4   ;;  %s1546_s6 = smov %s1210_s7 }
  0xdc   : > { %s1547_s7 = smov %s1214_s8  ;;  %s1548_s8 = smov %s1273_s15 }
  0xdd   : > { %s1549_s9 = smov %s1261_s12  ;;  %16 = sbr.rel (!%p14_p2) target bundleno = 5 (0x5), region = 69 }
  0xe4   :  { %684 = vsyncpa [#allocation3], 1 }
  0xe5   :  { %686 = vsyncpa [#allocation3 + $0x1], 1 }
  0xe6   :  { %687 = vsyncpa [#allocation4], 1 }
  0xe7   :  { %689 = vsyncpa [#allocation4 + $0x1], 1 }

</bundles_post_ra>
